<compile_context>
chip_gen: v5e
topology: v5e:2x2
jax: 0.10.0
libtpu: 0.0.40
codegen_flags: <defaults>
</compile_context>

<pallas_src>
import jax
import jax.numpy as jnp
from jax.experimental import pallas as pl
from jax.experimental.pallas import tpu as pltpu

# ----------------------------- model hyper-params ---------------------------
HIDDEN = 32
N_HEADS = 4
SEQ = 8
BATCH = 2

# rows of the "single (H,H) matrices" stack
(WS_SE_C, WS_SE_X, WS_SE_1, WS_FF_X, WS_FF_1) = range(5)
N_W_SINGLE = 5

# rows of the fused-GLU weight stack (each row is [W4 | W5] -> (H, 2H))
WG_SE, WG_FF = range(2)

# rows of the width-H vector stack (biases / layer-norm gammas & betas)
(VH_B_SE_X, VH_B_SE_1, VH_G_SE, VH_BE_SE,
 VH_B_O, VH_G_AN, VH_BE_AN,
 VH_B_FF_X, VH_B_FF_1, VH_G_FF, VH_BE_FF) = range(11)
N_VEC_H = 11

# rows of the width-2H vector stack (fused GLU biases [b4 | b5])
VG_SE, VG_FF = range(2)


# ------------------------------ kernel helpers -------------------------------
def _elu(a):
    # exp only on the non-positive branch -> no inf generation for large a
    return jnp.where(a > 0, a, jnp.exp(jnp.minimum(a, 0.0)) - 1.0)


def _sigmoid(a):
    # EUP exp + EUP approximate reciprocal (keeps the divide off the VALU slots)
    return pl.reciprocal(1.0 + jnp.exp(-a), approx=True)


def _layer_norm(x, gamma, beta, eps=1e-5):
    mean = jnp.mean(x, axis=-1, keepdims=True)
    var = jnp.mean((x - mean) ** 2, axis=-1, keepdims=True)
    return (x - mean) * jax.lax.rsqrt(var + eps) * gamma + beta


# --------------------------------- kernel -----------------------------------
def tfd_kernel(x_ref, st_ref, ws_ref, wglu_ref, wqkv_ref, bqkv_ref, wo_ref,
               vh_ref, v2h_ref, o_ref):
    BB, T, H = x_ref.shape
    NH = wqkv_ref.shape[0]
    dh = H // NH
    BT = BB * T
    f32 = jnp.float32

    x0 = x_ref[...].reshape(BT, H)                      # flattened (BB*T, H) slab

    def Wm(i):
        return ws_ref[i]                                # (H, H)

    def Vrow(i):
        return vh_ref[pl.ds(i, 1), :]                   # (1, H) -> broadcasts over rows

    def mm(a, w):
        return jnp.dot(a, w, preferred_element_type=f32)

    def grn_glu(a, wg_idx, vg_idx):
        # fused GLU: one (BT, H) @ (H, 2H) matmul, then split sigmoid/linear halves
        g2 = mm(a, wglu_ref[wg_idx]) + v2h_ref[pl.ds(vg_idx, 1), :]      # (BT, 2H)
        return _sigmoid(g2[:, :H]) * g2[:, H:]

    def tile_bb(arr):
        # replicate a head-batched weight across the BB sequences of this block
        if BB == 1:
            return arr
        shp = arr.shape
        return jnp.broadcast_to(arr[None], (BB,) + shp).reshape(
            (BB * shp[0],) + shp[1:])

    # ---------------- static-enrichment GRN (with context) ----------------
    # context projection hoisted: one (BB,H)@(H,H) matmul (not one per timestep)
    cproj = mm(st_ref[...].reshape(BB, H), Wm(WS_SE_C))                  # (BB, H)

    a = mm(x0, Wm(WS_SE_X)) + Vrow(VH_B_SE_X)
    if BB == 1:
        a = a + cproj                                                    # (T,H)+(1,H)
    else:
        a = (a.reshape(BB, T, H) + cproj[:, None, :]).reshape(BT, H)
    a = _elu(a)
    a = mm(a, Wm(WS_SE_1)) + Vrow(VH_B_SE_1)
    g = grn_glu(a, WG_SE, VG_SE)
    x1 = _layer_norm(x0 + g, Vrow(VH_G_SE), Vrow(VH_BE_SE))

    # ---------------- multi-head self-attention (mask == None) ----------------
    # TODO(synk): optional attention mask not implemented (forward uses mask=None).
    # (If the reference is pytorch-forecasting's InterpretableMultiHeadAttention,
    #  the head handling differs; standard concat-MHA is implemented here.)
    if BB == 1:
        xh = jnp.broadcast_to(x1[None], (NH, T, H))                      # (NH, T, H)
    else:
        xh = jnp.broadcast_to(x1.reshape(BB, 1, T, H),
                              (BB, NH, T, H)).reshape(BB * NH, T, H)
    wq = tile_bb(wqkv_ref[...])                                          # (BB*NH, H, 3dh)
    bq = tile_bb(bqkv_ref[...])                                          # (BB*NH, 1, 3dh)
    wo = tile_bb(wo_ref[...])                                            # (BB*NH, dh, H)

    # single batched QKV projection (head-major weights -> no in-kernel transposes)
    qkv = jnp.einsum('btd,bdc->btc', xh, wq, preferred_element_type=f32) + bq
    scale = 1.0 / (float(dh) ** 0.5)
    q = qkv[:, :, 0:dh] * scale
    k = qkv[:, :, dh:2 * dh]
    v = qkv[:, :, 2 * dh:3 * dh]

    s = jnp.einsum('bqd,bkd->bqk', q, k, preferred_element_type=f32)     # (BB*NH, T, T)
    s = s - jnp.max(s, axis=-1, keepdims=True)                           # one batched reduce
    p = jnp.exp(s)
    p = p * pl.reciprocal(jnp.sum(p, axis=-1, keepdims=True), approx=True)
    oh = jnp.einsum('bqk,bkd->bqd', p, v, preferred_element_type=f32)    # (BB*NH, T, dh)

    # head-merge fused with output projection: attn = sum_h oh_h @ W_O[h]
    ao = jnp.einsum('bqd,bde->bqe', oh, wo, preferred_element_type=f32)  # (BB*NH, T, H)
    if BB == 1:
        attn = jnp.sum(ao, axis=0)                                       # (T, H)
    else:
        attn = jnp.sum(ao.reshape(BB, NH, T, H), axis=1).reshape(BT, H)
    attn = attn + Vrow(VH_B_O)

    # ---------------- Add & Norm ----------------
    x2 = _layer_norm(x1 + attn, Vrow(VH_G_AN), Vrow(VH_BE_AN))

    # ---------------- position-wise feed-forward GRN (no context) ----------------
    a = mm(x2, Wm(WS_FF_X)) + Vrow(VH_B_FF_X)
    a = _elu(a)
    a = mm(a, Wm(WS_FF_1)) + Vrow(VH_B_FF_1)
    g = grn_glu(a, WG_FF, VG_FF)
    x3 = _layer_norm(x2 + g, Vrow(VH_G_FF), Vrow(VH_BE_FF))

    o_ref[...] = x3.reshape(BB, T, H).astype(o_ref.dtype)


# -------------------------------- wrapper ------------------------------------
def temporal_fusion_decoder(x, static, packed):
    """x: [B, T, H] float32, static: [B, H] float32, packed: dict of stacked params."""
    B, T, H = x.shape
    NH = packed["w_qkv_h"].shape[0]
    dh = H // NH

    # Two parallel grid steps when possible (keeps both v7x TensorCores busy);
    # each step processes a flattened (BB*T, H) slab.  On v5e/v6e a single fat
    # step would also be fine.
    num_blocks = 2 if (B >= 2 and B % 2 == 0) else 1
    BB = B // num_blocks

    static3 = static.reshape(B, 1, H).astype(jnp.float32)

    grid_spec = pltpu.PrefetchScalarGridSpec(
        num_scalar_prefetch=0,
        grid=(num_blocks,),
        in_specs=[
            pl.BlockSpec((BB, T, H), lambda i: (i, 0, 0)),               # x block
            pl.BlockSpec((BB, 1, H), lambda i: (i, 0, 0)),               # static block
            pl.BlockSpec((N_W_SINGLE, H, H), lambda i: (0, 0, 0)),       # single mats
            pl.BlockSpec((2, H, 2 * H), lambda i: (0, 0, 0)),            # fused GLU mats
            pl.BlockSpec((NH, H, 3 * dh), lambda i: (0, 0, 0)),          # head-major QKV
            pl.BlockSpec((NH, 1, 3 * dh), lambda i: (0, 0, 0)),          # head-major QKV bias
            pl.BlockSpec((NH, dh, H), lambda i: (0, 0, 0)),              # head-major W_O
            pl.BlockSpec((N_VEC_H, H), lambda i: (0, 0)),                # width-H vectors
            pl.BlockSpec((2, 2 * H), lambda i: (0, 0)),                  # width-2H vectors
        ],
        out_specs=pl.BlockSpec((BB, T, H), lambda i: (i, 0, 0)),
    )

    return pl.pallas_call(
        tfd_kernel,
        out_shape=jax.ShapeDtypeStruct((B, T, H), jnp.float32),
        grid_spec=grid_spec,
        compiler_params=pltpu.CompilerParams(
            dimension_semantics=("parallel",)),
    )(x.astype(jnp.float32), static3,
      packed["w_single"], packed["w_glu"], packed["w_qkv_h"],
      packed["b_qkv_h"], packed["w_o_h"], packed["vec_h"], packed["vec_2h"])


# ------------------------------ parameter setup ------------------------------
def init_params(key):
    """Canonical (unfused) parameters of the module."""
    kw, kb = jax.random.split(key)
    w_names = ["se_x", "se_c", "se_1", "se_g4", "se_g5",
               "q", "k", "v", "o", "ff_x", "ff_1", "ff_g4", "ff_g5"]
    b_names = ["se_x", "se_1", "se_g4", "se_g5",
               "q", "k", "v", "o", "ff_x", "ff_1", "ff_g4", "ff_g5"]
    Wall = jax.random.normal(kw, (len(w_names), HIDDEN, HIDDEN),
                             jnp.float32) / jnp.sqrt(jnp.float32(HIDDEN))
    ball = jax.random.normal(kb, (len(b_names), HIDDEN), jnp.float32) * 0.1
    p = {}
    for i, n in enumerate(w_names):
        p["W_" + n] = Wall[i]
    for i, n in enumerate(b_names):
        p["b_" + n] = ball[i]
    for ln in ("se", "an", "ff"):
        p["g_" + ln] = jnp.ones((HIDDEN,), jnp.float32)     # LayerNorm gamma
        p["be_" + ln] = jnp.zeros((HIDDEN,), jnp.float32)   # LayerNorm beta
    return p


def pack_params(p, n_heads=N_HEADS):
    """Restack canonical params into the fused layout the kernel consumes."""
    H = p["W_se_x"].shape[0]
    dh = H // n_heads

    w_single = jnp.stack([p["W_se_c"], p["W_se_x"], p["W_se_1"],
                          p["W_ff_x"], p["W_ff_1"]], axis=0)             # (5, H, H)
    w_glu = jnp.stack(
        [jnp.concatenate([p["W_se_g4"], p["W_se_g5"]], axis=1),
         jnp.concatenate([p["W_ff_g4"], p["W_ff_g5"]], axis=1)], axis=0)  # (2, H, 2H)

    def head_major(w):                                   # (H, H) -> (NH, H, dh)
        return w.reshape(H, n_heads, dh).transpose(1, 0, 2)

    w_qkv_h = jnp.concatenate([head_major(p["W_q"]),
                               head_major(p["W_k"]),
                               head_major(p["W_v"])], axis=-1)           # (NH, H, 3dh)
    b_qkv_h = jnp.concatenate([p["b_q"].reshape(n_heads, 1, dh),
                               p["b_k"].reshape(n_heads, 1, dh),
                               p["b_v"].reshape(n_heads, 1, dh)], axis=-1)  # (NH, 1, 3dh)
    w_o_h = p["W_o"].reshape(n_heads, dh, H)                             # (NH, dh, H)

    vec_h = jnp.stack([p["b_se_x"], p["b_se_1"], p["g_se"], p["be_se"],
                       p["b_o"], p["g_an"], p["be_an"],
                       p["b_ff_x"], p["b_ff_1"], p["g_ff"], p["be_ff"]],
                      axis=0)                                            # (11, H)
    vec_2h = jnp.stack([jnp.concatenate([p["b_se_g4"], p["b_se_g5"]]),
                        jnp.concatenate([p["b_ff_g4"], p["b_ff_g5"]])],
                       axis=0)                                           # (2, 2H)

    return dict(w_single=w_single, w_glu=w_glu, w_qkv_h=w_qkv_h,
                b_qkv_h=b_qkv_h, w_o_h=w_o_h, vec_h=vec_h, vec_2h=vec_2h)


if __name__ == "__main__":
    key = jax.random.PRNGKey(0)
    kx, ks, kp = jax.random.split(key, 3)
    x = jax.random.normal(kx, (BATCH, SEQ, HIDDEN), jnp.float32)
    static = jax.random.normal(ks, (BATCH, HIDDEN), jnp.float32)
    params = init_params(kp)
    packed = pack_params(params)

    out = temporal_fusion_decoder(x, static, packed)
    out = jax.block_until_ready(out)

    assert out.shape == (BATCH, SEQ, HIDDEN)
    assert bool(jnp.all(jnp.isfinite(out)))
    print("KERNEL_OK")
</pallas_src>

<mosaic_0001>
module attributes {stable_mosaic.version = 11 : i64} {
  func.func @tfd_kernel(%arg0: i32, %arg1: memref<1x8x32xf32, #tpu.memory_space<vmem>>, %arg2: memref<1x1x32xf32, #tpu.memory_space<vmem>>, %arg3: memref<5x32x32xf32, #tpu.memory_space<vmem>>, %arg4: memref<2x32x64xf32, #tpu.memory_space<vmem>>, %arg5: memref<4x32x24xf32, #tpu.memory_space<vmem>>, %arg6: memref<4x1x24xf32, #tpu.memory_space<vmem>>, %arg7: memref<4x8x32xf32, #tpu.memory_space<vmem>>, %arg8: memref<11x32xf32, #tpu.memory_space<vmem>>, %arg9: memref<2x64xf32, #tpu.memory_space<vmem>>, %arg10: memref<1x8x32xf32, #tpu.memory_space<vmem>>) attributes {dimension_semantics = [#tpu.dimension_semantics<parallel>], iteration_bounds = array<i64: 2>, scalar_prefetch = 0 : i64, scratch_operands = 0 : i64, tpu.core_type = #tpu.core_type<tc>, window_params = [{transform_indices = @transform_0, window_bounds = array<i64: 1, 8, 32>}, {transform_indices = @transform_1, window_bounds = array<i64: 1, 1, 32>}, {pipeline_mode = #tpu.pipeline_mode<synchronous>, transform_indices = @transform_2, window_bounds = array<i64: 5, 32, 32>}, {pipeline_mode = #tpu.pipeline_mode<synchronous>, transform_indices = @transform_3, window_bounds = array<i64: 2, 32, 64>}, {pipeline_mode = #tpu.pipeline_mode<synchronous>, transform_indices = @transform_4, window_bounds = array<i64: 4, 32, 24>}, {pipeline_mode = #tpu.pipeline_mode<synchronous>, transform_indices = @transform_5, window_bounds = array<i64: 4, 1, 24>}, {pipeline_mode = #tpu.pipeline_mode<synchronous>, transform_indices = @transform_6, window_bounds = array<i64: 4, 8, 32>}, {pipeline_mode = #tpu.pipeline_mode<synchronous>, transform_indices = @transform_7, window_bounds = array<i64: 11, 32>}, {pipeline_mode = #tpu.pipeline_mode<synchronous>, transform_indices = @transform_8, window_bounds = array<i64: 2, 64>}, {transform_indices = @transform_9, window_bounds = array<i64: 1, 8, 32>}]} {
    %c0 = arith.constant 0 : index
    %c0_0 = arith.constant 0 : index
    %c0_1 = arith.constant 0 : index
    %0 = vector.load %arg1[%c0, %c0_0, %c0_1] : memref<1x8x32xf32, #tpu.memory_space<vmem>>, vector<1x8x32xf32>
    %1 = vector.shape_cast %0 : vector<1x8x32xf32> to vector<8x32xf32>
    %c0_2 = arith.constant 0 : index
    %c0_3 = arith.constant 0 : index
    %c0_4 = arith.constant 0 : index
    %2 = vector.load %arg2[%c0_2, %c0_3, %c0_4] : memref<1x1x32xf32, #tpu.memory_space<vmem>>, vector<1x1x32xf32>
    %3 = vector.shape_cast %2 : vector<1x1x32xf32> to vector<1x32xf32>
    %c0_5 = arith.constant 0 : index
    %c0_6 = arith.constant 0 : index
    %c0_7 = arith.constant 0 : index
    %4 = vector.load %arg3[%c0_5, %c0_6, %c0_7] : memref<5x32x32xf32, #tpu.memory_space<vmem>>, vector<1x32x32xf32>
    %5 = vector.shape_cast %4 : vector<1x32x32xf32> to vector<32x32xf32>
    %cst = arith.constant dense<0.000000e+00> : vector<1x32xf32>
    %6 = tpu.matmul %3, %5, %cst {dimension_numbers = #tpu.dot_dimension_numbers<[1], [0], [0], [1], [0, 0, 1, 1], [], []>} : vector<1x32xf32>, vector<32x32xf32>, vector<1x32xf32> -> vector<1x32xf32>
    %c1 = arith.constant 1 : index
    %c0_8 = arith.constant 0 : index
    %c0_9 = arith.constant 0 : index
    %7 = vector.load %arg3[%c1, %c0_8, %c0_9] : memref<5x32x32xf32, #tpu.memory_space<vmem>>, vector<1x32x32xf32>
    %8 = vector.shape_cast %7 : vector<1x32x32xf32> to vector<32x32xf32>
    %cst_10 = arith.constant dense<0.000000e+00> : vector<8x32xf32>
    %9 = tpu.matmul %1, %8, %cst_10 {dimension_numbers = #tpu.dot_dimension_numbers<[1], [0], [0], [1], [0, 0, 1, 1], [], []>} : vector<8x32xf32>, vector<32x32xf32>, vector<8x32xf32> -> vector<8x32xf32>
    %c0_11 = arith.constant 0 : index
    %c0_12 = arith.constant 0 : index
    %10 = vector.load %arg8[%c0_11, %c0_12] : memref<11x32xf32, #tpu.memory_space<vmem>>, vector<1x32xf32>
    %11 = vector.broadcast %10 : vector<1x32xf32> to vector<8x32xf32>
    %12 = arith.addf %9, %11 : vector<8x32xf32>
    %13 = vector.broadcast %6 : vector<1x32xf32> to vector<8x32xf32>
    %14 = arith.addf %12, %13 : vector<8x32xf32>
    %cst_13 = arith.constant 0.000000e+00 : f32
    %15 = vector.broadcast %cst_13 : f32 to vector<8x32xf32>
    %16 = arith.cmpf ogt, %14, %15 : vector<8x32xf32>
    %cst_14 = arith.constant 0.000000e+00 : f32
    %17 = vector.broadcast %cst_14 : f32 to vector<8x32xf32>
    %18 = arith.minimumf %14, %17 : vector<8x32xf32>
    %19 = math.exp %18 : vector<8x32xf32>
    %cst_15 = arith.constant 1.000000e+00 : f32
    %20 = vector.broadcast %cst_15 : f32 to vector<8x32xf32>
    %21 = arith.subf %19, %20 : vector<8x32xf32>
    %22 = arith.select %16, %14, %21 : vector<8x32xi1>, vector<8x32xf32>
    %c2 = arith.constant 2 : index
    %c0_16 = arith.constant 0 : index
    %c0_17 = arith.constant 0 : index
    %23 = vector.load %arg3[%c2, %c0_16, %c0_17] : memref<5x32x32xf32, #tpu.memory_space<vmem>>, vector<1x32x32xf32>
    %24 = vector.shape_cast %23 : vector<1x32x32xf32> to vector<32x32xf32>
    %cst_18 = arith.constant dense<0.000000e+00> : vector<8x32xf32>
    %25 = tpu.matmul %22, %24, %cst_18 {dimension_numbers = #tpu.dot_dimension_numbers<[1], [0], [0], [1], [0, 0, 1, 1], [], []>} : vector<8x32xf32>, vector<32x32xf32>, vector<8x32xf32> -> vector<8x32xf32>
    %c1_19 = arith.constant 1 : index
    %c0_20 = arith.constant 0 : index
    %26 = vector.load %arg8[%c1_19, %c0_20] : memref<11x32xf32, #tpu.memory_space<vmem>>, vector<1x32xf32>
    %27 = vector.broadcast %26 : vector<1x32xf32> to vector<8x32xf32>
    %28 = arith.addf %25, %27 : vector<8x32xf32>
    %c0_21 = arith.constant 0 : index
    %c0_22 = arith.constant 0 : index
    %c0_23 = arith.constant 0 : index
    %29 = vector.load %arg4[%c0_21, %c0_22, %c0_23] : memref<2x32x64xf32, #tpu.memory_space<vmem>>, vector<1x32x64xf32>
    %30 = vector.shape_cast %29 : vector<1x32x64xf32> to vector<32x64xf32>
    %cst_24 = arith.constant dense<0.000000e+00> : vector<8x64xf32>
    %31 = tpu.matmul %28, %30, %cst_24 {dimension_numbers = #tpu.dot_dimension_numbers<[1], [0], [0], [1], [0, 0, 1, 1], [], []>} : vector<8x32xf32>, vector<32x64xf32>, vector<8x64xf32> -> vector<8x64xf32>
    %c0_25 = arith.constant 0 : index
    %c0_26 = arith.constant 0 : index
    %32 = vector.load %arg9[%c0_25, %c0_26] : memref<2x64xf32, #tpu.memory_space<vmem>>, vector<1x64xf32>
    %33 = vector.broadcast %32 : vector<1x64xf32> to vector<8x64xf32>
    %34 = arith.addf %31, %33 : vector<8x64xf32>
    %35 = vector.extract_strided_slice %34 {offsets = [0, 0], sizes = [8, 32], strides = [1, 1]} : vector<8x64xf32> to vector<8x32xf32>
    %cst_27 = arith.constant 0.000000e+00 : f32
    %36 = vector.broadcast %cst_27 : f32 to vector<8x32xf32>
    %37 = arith.subf %36, %35 : vector<8x32xf32>
    %38 = math.exp %37 : vector<8x32xf32>
    %cst_28 = arith.constant 1.000000e+00 : f32
    %39 = vector.broadcast %cst_28 : f32 to vector<8x32xf32>
    %40 = arith.addf %39, %38 : vector<8x32xf32>
    %41 = tpu.reciprocal %40 {approx = true} : vector<8x32xf32> -> vector<8x32xf32>
    %42 = vector.extract_strided_slice %34 {offsets = [0, 32], sizes = [8, 32], strides = [1, 1]} : vector<8x64xf32> to vector<8x32xf32>
    %43 = arith.mulf %41, %42 : vector<8x32xf32>
    %44 = arith.addf %1, %43 : vector<8x32xf32>
    %c2_29 = arith.constant 2 : index
    %c0_30 = arith.constant 0 : index
    %45 = vector.load %arg8[%c2_29, %c0_30] : memref<11x32xf32, #tpu.memory_space<vmem>>, vector<1x32xf32>
    %c3 = arith.constant 3 : index
    %c0_31 = arith.constant 0 : index
    %46 = vector.load %arg8[%c3, %c0_31] : memref<11x32xf32, #tpu.memory_space<vmem>>, vector<1x32xf32>
    %cst_32 = arith.constant dense<0.000000e+00> : vector<8xf32>
    %47 = vector.multi_reduction <add>, %44, %cst_32 [1] : vector<8x32xf32> to vector<8xf32>
    %48 = vector.shape_cast %47 : vector<8xf32> to vector<8x1xf32>
    %cst_33 = arith.constant 3.200000e+01 : f32
    %49 = vector.broadcast %cst_33 : f32 to vector<8x1xf32>
    %50 = arith.divf %48, %49 : vector<8x1xf32>
    %51 = vector.broadcast %50 : vector<8x1xf32> to vector<8x32xf32>
    %52 = arith.subf %44, %51 : vector<8x32xf32>
    %53 = arith.mulf %52, %52 : vector<8x32xf32>
    %cst_34 = arith.constant dense<0.000000e+00> : vector<8xf32>
    %54 = vector.multi_reduction <add>, %53, %cst_34 [1] : vector<8x32xf32> to vector<8xf32>
    %55 = vector.shape_cast %54 : vector<8xf32> to vector<8x1xf32>
    %cst_35 = arith.constant 3.200000e+01 : f32
    %56 = vector.broadcast %cst_35 : f32 to vector<8x1xf32>
    %57 = arith.divf %55, %56 : vector<8x1xf32>
    %58 = vector.broadcast %50 : vector<8x1xf32> to vector<8x32xf32>
    %59 = arith.subf %44, %58 : vector<8x32xf32>
    %cst_36 = arith.constant 9.99999974E-6 : f32
    %60 = vector.broadcast %cst_36 : f32 to vector<8x1xf32>
    %61 = arith.addf %57, %60 : vector<8x1xf32>
    %62 = math.rsqrt %61 : vector<8x1xf32>
    %63 = vector.broadcast %62 : vector<8x1xf32> to vector<8x32xf32>
    %64 = arith.mulf %59, %63 : vector<8x32xf32>
    %65 = vector.broadcast %45 : vector<1x32xf32> to vector<8x32xf32>
    %66 = arith.mulf %64, %65 : vector<8x32xf32>
    %67 = vector.broadcast %46 : vector<1x32xf32> to vector<8x32xf32>
    %68 = arith.addf %66, %67 : vector<8x32xf32>
    %69 = vector.shape_cast %68 : vector<8x32xf32> to vector<1x8x32xf32>
    %70 = vector.shape_cast %69 : vector<1x8x32xf32> to vector<1x8x32xf32>
    %71 = vector.broadcast %70 : vector<1x8x32xf32> to vector<4x8x32xf32>
    %c0_37 = arith.constant 0 : index
    %c0_38 = arith.constant 0 : index
    %c0_39 = arith.constant 0 : index
    %72 = vector.load %arg5[%c0_37, %c0_38, %c0_39] : memref<4x32x24xf32, #tpu.memory_space<vmem>>, vector<4x32x24xf32>
    %c0_40 = arith.constant 0 : index
    %c0_41 = arith.constant 0 : index
    %c0_42 = arith.constant 0 : index
    %73 = vector.load %arg6[%c0_40, %c0_41, %c0_42] : memref<4x1x24xf32, #tpu.memory_space<vmem>>, vector<4x1x24xf32>
    %c0_43 = arith.constant 0 : index
    %c0_44 = arith.constant 0 : index
    %c0_45 = arith.constant 0 : index
    %74 = vector.load %arg7[%c0_43, %c0_44, %c0_45] : memref<4x8x32xf32, #tpu.memory_space<vmem>>, vector<4x8x32xf32>
    "tpu.trace_start"() <{level = 10 : i32, message = "btd,bdc->btc"}> : () -> ()
    %cst_46 = arith.constant dense<0.000000e+00> : vector<4x8x24xf32>
    %75 = tpu.matmul %71, %72, %cst_46 {dimension_numbers = #tpu.dot_dimension_numbers<[2], [1], [1], [2], [0, 0, 0, 1, 1, 2], [0], [0]>} : vector<4x8x32xf32>, vector<4x32x24xf32>, vector<4x8x24xf32> -> vector<4x8x24xf32>
    "tpu.trace_stop"() : () -> ()
    %76 = vector.broadcast %73 : vector<4x1x24xf32> to vector<4x8x24xf32>
    %77 = arith.addf %75, %76 : vector<4x8x24xf32>
    %78 = vector.extract_strided_slice %77 {offsets = [0, 0, 0], sizes = [4, 8, 8], strides = [1, 1, 1]} : vector<4x8x24xf32> to vector<4x8x8xf32>
    %cst_47 = arith.constant 0.353553385 : f32
    %79 = vector.broadcast %cst_47 : f32 to vector<4x8x8xf32>
    %80 = arith.mulf %78, %79 : vector<4x8x8xf32>
    %81 = vector.extract_strided_slice %77 {offsets = [0, 0, 8], sizes = [4, 8, 8], strides = [1, 1, 1]} : vector<4x8x24xf32> to vector<4x8x8xf32>
    %82 = vector.extract_strided_slice %77 {offsets = [0, 0, 16], sizes = [4, 8, 8], strides = [1, 1, 1]} : vector<4x8x24xf32> to vector<4x8x8xf32>
    "tpu.trace_start"() <{level = 10 : i32, message = "bqd,bkd->bqk"}> : () -> ()
    %cst_48 = arith.constant dense<0.000000e+00> : vector<4x8x8xf32>
    %83 = tpu.matmul %80, %81, %cst_48 {dimension_numbers = #tpu.dot_dimension_numbers<[2], [2], [1], [1], [0, 0, 0, 1, 1, 1], [0], [0]>} : vector<4x8x8xf32>, vector<4x8x8xf32>, vector<4x8x8xf32> -> vector<4x8x8xf32>
    "tpu.trace_stop"() : () -> ()
    %cst_49 = arith.constant dense<0xFF800000> : vector<4x8xf32>
    %84 = vector.multi_reduction <maximumf>, %83, %cst_49 [2] : vector<4x8x8xf32> to vector<4x8xf32>
    %85 = vector.shape_cast %84 : vector<4x8xf32> to vector<4x8x1xf32>
    %86 = vector.broadcast %85 : vector<4x8x1xf32> to vector<4x8x8xf32>
    %87 = arith.subf %83, %86 : vector<4x8x8xf32>
    %88 = math.exp %87 : vector<4x8x8xf32>
    %cst_50 = arith.constant dense<0.000000e+00> : vector<4x8xf32>
    %89 = vector.multi_reduction <add>, %88, %cst_50 [2] : vector<4x8x8xf32> to vector<4x8xf32>
    %90 = vector.shape_cast %89 : vector<4x8xf32> to vector<4x8x1xf32>
    %91 = tpu.reciprocal %90 {approx = true} : vector<4x8x1xf32> -> vector<4x8x1xf32>
    %92 = vector.broadcast %91 : vector<4x8x1xf32> to vector<4x8x8xf32>
    %93 = arith.mulf %88, %92 : vector<4x8x8xf32>
    "tpu.trace_start"() <{level = 10 : i32, message = "bqk,bkd->bqd"}> : () -> ()
    %cst_51 = arith.constant dense<0.000000e+00> : vector<4x8x8xf32>
    %94 = tpu.matmul %93, %82, %cst_51 {dimension_numbers = #tpu.dot_dimension_numbers<[2], [1], [1], [2], [0, 0, 0, 1, 1, 2], [0], [0]>} : vector<4x8x8xf32>, vector<4x8x8xf32>, vector<4x8x8xf32> -> vector<4x8x8xf32>
    "tpu.trace_stop"() : () -> ()
    "tpu.trace_start"() <{level = 10 : i32, message = "bqd,bde->bqe"}> : () -> ()
    %cst_52 = arith.constant dense<0.000000e+00> : vector<4x8x32xf32>
    %95 = tpu.matmul %94, %74, %cst_52 {dimension_numbers = #tpu.dot_dimension_numbers<[2], [1], [1], [2], [0, 0, 0, 1, 1, 2], [0], [0]>} : vector<4x8x8xf32>, vector<4x8x32xf32>, vector<4x8x32xf32> -> vector<4x8x32xf32>
    "tpu.trace_stop"() : () -> ()
    %cst_53 = arith.constant dense<0.000000e+00> : vector<8x32xf32>
    %96 = vector.multi_reduction <add>, %95, %cst_53 [0] : vector<4x8x32xf32> to vector<8x32xf32>
    %c4 = arith.constant 4 : index
    %c0_54 = arith.constant 0 : index
    %97 = vector.load %arg8[%c4, %c0_54] : memref<11x32xf32, #tpu.memory_space<vmem>>, vector<1x32xf32>
    %98 = vector.broadcast %97 : vector<1x32xf32> to vector<8x32xf32>
    %99 = arith.addf %96, %98 : vector<8x32xf32>
    %100 = arith.addf %68, %99 : vector<8x32xf32>
    %c5 = arith.constant 5 : index
    %c0_55 = arith.constant 0 : index
    %101 = vector.load %arg8[%c5, %c0_55] : memref<11x32xf32, #tpu.memory_space<vmem>>, vector<1x32xf32>
    %c6 = arith.constant 6 : index
    %c0_56 = arith.constant 0 : index
    %102 = vector.load %arg8[%c6, %c0_56] : memref<11x32xf32, #tpu.memory_space<vmem>>, vector<1x32xf32>
    %cst_57 = arith.constant dense<0.000000e+00> : vector<8xf32>
    %103 = vector.multi_reduction <add>, %100, %cst_57 [1] : vector<8x32xf32> to vector<8xf32>
    %104 = vector.shape_cast %103 : vector<8xf32> to vector<8x1xf32>
    %cst_58 = arith.constant 3.200000e+01 : f32
    %105 = vector.broadcast %cst_58 : f32 to vector<8x1xf32>
    %106 = arith.divf %104, %105 : vector<8x1xf32>
    %107 = vector.broadcast %106 : vector<8x1xf32> to vector<8x32xf32>
    %108 = arith.subf %100, %107 : vector<8x32xf32>
    %109 = arith.mulf %108, %108 : vector<8x32xf32>
    %cst_59 = arith.constant dense<0.000000e+00> : vector<8xf32>
    %110 = vector.multi_reduction <add>, %109, %cst_59 [1] : vector<8x32xf32> to vector<8xf32>
    %111 = vector.shape_cast %110 : vector<8xf32> to vector<8x1xf32>
    %cst_60 = arith.constant 3.200000e+01 : f32
    %112 = vector.broadcast %cst_60 : f32 to vector<8x1xf32>
    %113 = arith.divf %111, %112 : vector<8x1xf32>
    %114 = vector.broadcast %106 : vector<8x1xf32> to vector<8x32xf32>
    %115 = arith.subf %100, %114 : vector<8x32xf32>
    %cst_61 = arith.constant 9.99999974E-6 : f32
    %116 = vector.broadcast %cst_61 : f32 to vector<8x1xf32>
    %117 = arith.addf %113, %116 : vector<8x1xf32>
    %118 = math.rsqrt %117 : vector<8x1xf32>
    %119 = vector.broadcast %118 : vector<8x1xf32> to vector<8x32xf32>
    %120 = arith.mulf %115, %119 : vector<8x32xf32>
    %121 = vector.broadcast %101 : vector<1x32xf32> to vector<8x32xf32>
    %122 = arith.mulf %120, %121 : vector<8x32xf32>
    %123 = vector.broadcast %102 : vector<1x32xf32> to vector<8x32xf32>
    %124 = arith.addf %122, %123 : vector<8x32xf32>
    %c3_62 = arith.constant 3 : index
    %c0_63 = arith.constant 0 : index
    %c0_64 = arith.constant 0 : index
    %125 = vector.load %arg3[%c3_62, %c0_63, %c0_64] : memref<5x32x32xf32, #tpu.memory_space<vmem>>, vector<1x32x32xf32>
    %126 = vector.shape_cast %125 : vector<1x32x32xf32> to vector<32x32xf32>
    %cst_65 = arith.constant dense<0.000000e+00> : vector<8x32xf32>
    %127 = tpu.matmul %124, %126, %cst_65 {dimension_numbers = #tpu.dot_dimension_numbers<[1], [0], [0], [1], [0, 0, 1, 1], [], []>} : vector<8x32xf32>, vector<32x32xf32>, vector<8x32xf32> -> vector<8x32xf32>
    %c7 = arith.constant 7 : index
    %c0_66 = arith.constant 0 : index
    %128 = vector.load %arg8[%c7, %c0_66] : memref<11x32xf32, #tpu.memory_space<vmem>>, vector<1x32xf32>
    %129 = vector.broadcast %128 : vector<1x32xf32> to vector<8x32xf32>
    %130 = arith.addf %127, %129 : vector<8x32xf32>
    %cst_67 = arith.constant 0.000000e+00 : f32
    %131 = vector.broadcast %cst_67 : f32 to vector<8x32xf32>
    %132 = arith.cmpf ogt, %130, %131 : vector<8x32xf32>
    %cst_68 = arith.constant 0.000000e+00 : f32
    %133 = vector.broadcast %cst_68 : f32 to vector<8x32xf32>
    %134 = arith.minimumf %130, %133 : vector<8x32xf32>
    %135 = math.exp %134 : vector<8x32xf32>
    %cst_69 = arith.constant 1.000000e+00 : f32
    %136 = vector.broadcast %cst_69 : f32 to vector<8x32xf32>
    %137 = arith.subf %135, %136 : vector<8x32xf32>
    %138 = arith.select %132, %130, %137 : vector<8x32xi1>, vector<8x32xf32>
    %c4_70 = arith.constant 4 : index
    %c0_71 = arith.constant 0 : index
    %c0_72 = arith.constant 0 : index
    %139 = vector.load %arg3[%c4_70, %c0_71, %c0_72] : memref<5x32x32xf32, #tpu.memory_space<vmem>>, vector<1x32x32xf32>
    %140 = vector.shape_cast %139 : vector<1x32x32xf32> to vector<32x32xf32>
    %cst_73 = arith.constant dense<0.000000e+00> : vector<8x32xf32>
    %141 = tpu.matmul %138, %140, %cst_73 {dimension_numbers = #tpu.dot_dimension_numbers<[1], [0], [0], [1], [0, 0, 1, 1], [], []>} : vector<8x32xf32>, vector<32x32xf32>, vector<8x32xf32> -> vector<8x32xf32>
    %c8 = arith.constant 8 : index
    %c0_74 = arith.constant 0 : index
    %142 = vector.load %arg8[%c8, %c0_74] : memref<11x32xf32, #tpu.memory_space<vmem>>, vector<1x32xf32>
    %143 = vector.broadcast %142 : vector<1x32xf32> to vector<8x32xf32>
    %144 = arith.addf %141, %143 : vector<8x32xf32>
    %c1_75 = arith.constant 1 : index
    %c0_76 = arith.constant 0 : index
    %c0_77 = arith.constant 0 : index
    %145 = vector.load %arg4[%c1_75, %c0_76, %c0_77] : memref<2x32x64xf32, #tpu.memory_space<vmem>>, vector<1x32x64xf32>
    %146 = vector.shape_cast %145 : vector<1x32x64xf32> to vector<32x64xf32>
    %cst_78 = arith.constant dense<0.000000e+00> : vector<8x64xf32>
    %147 = tpu.matmul %144, %146, %cst_78 {dimension_numbers = #tpu.dot_dimension_numbers<[1], [0], [0], [1], [0, 0, 1, 1], [], []>} : vector<8x32xf32>, vector<32x64xf32>, vector<8x64xf32> -> vector<8x64xf32>
    %c1_79 = arith.constant 1 : index
    %c0_80 = arith.constant 0 : index
    %148 = vector.load %arg9[%c1_79, %c0_80] : memref<2x64xf32, #tpu.memory_space<vmem>>, vector<1x64xf32>
    %149 = vector.broadcast %148 : vector<1x64xf32> to vector<8x64xf32>
    %150 = arith.addf %147, %149 : vector<8x64xf32>
    %151 = vector.extract_strided_slice %150 {offsets = [0, 0], sizes = [8, 32], strides = [1, 1]} : vector<8x64xf32> to vector<8x32xf32>
    %cst_81 = arith.constant 0.000000e+00 : f32
    %152 = vector.broadcast %cst_81 : f32 to vector<8x32xf32>
    %153 = arith.subf %152, %151 : vector<8x32xf32>
    %154 = math.exp %153 : vector<8x32xf32>
    %cst_82 = arith.constant 1.000000e+00 : f32
    %155 = vector.broadcast %cst_82 : f32 to vector<8x32xf32>
    %156 = arith.addf %155, %154 : vector<8x32xf32>
    %157 = tpu.reciprocal %156 {approx = true} : vector<8x32xf32> -> vector<8x32xf32>
    %158 = vector.extract_strided_slice %150 {offsets = [0, 32], sizes = [8, 32], strides = [1, 1]} : vector<8x64xf32> to vector<8x32xf32>
    %159 = arith.mulf %157, %158 : vector<8x32xf32>
    %160 = arith.addf %124, %159 : vector<8x32xf32>
    %c9 = arith.constant 9 : index
    %c0_83 = arith.constant 0 : index
    %161 = vector.load %arg8[%c9, %c0_83] : memref<11x32xf32, #tpu.memory_space<vmem>>, vector<1x32xf32>
    %c10 = arith.constant 10 : index
    %c0_84 = arith.constant 0 : index
    %162 = vector.load %arg8[%c10, %c0_84] : memref<11x32xf32, #tpu.memory_space<vmem>>, vector<1x32xf32>
    %cst_85 = arith.constant dense<0.000000e+00> : vector<8xf32>
    %163 = vector.multi_reduction <add>, %160, %cst_85 [1] : vector<8x32xf32> to vector<8xf32>
    %164 = vector.shape_cast %163 : vector<8xf32> to vector<8x1xf32>
    %cst_86 = arith.constant 3.200000e+01 : f32
    %165 = vector.broadcast %cst_86 : f32 to vector<8x1xf32>
    %166 = arith.divf %164, %165 : vector<8x1xf32>
    %167 = vector.broadcast %166 : vector<8x1xf32> to vector<8x32xf32>
    %168 = arith.subf %160, %167 : vector<8x32xf32>
    %169 = arith.mulf %168, %168 : vector<8x32xf32>
    %cst_87 = arith.constant dense<0.000000e+00> : vector<8xf32>
    %170 = vector.multi_reduction <add>, %169, %cst_87 [1] : vector<8x32xf32> to vector<8xf32>
    %171 = vector.shape_cast %170 : vector<8xf32> to vector<8x1xf32>
    %cst_88 = arith.constant 3.200000e+01 : f32
    %172 = vector.broadcast %cst_88 : f32 to vector<8x1xf32>
    %173 = arith.divf %171, %172 : vector<8x1xf32>
    %174 = vector.broadcast %166 : vector<8x1xf32> to vector<8x32xf32>
    %175 = arith.subf %160, %174 : vector<8x32xf32>
    %cst_89 = arith.constant 9.99999974E-6 : f32
    %176 = vector.broadcast %cst_89 : f32 to vector<8x1xf32>
    %177 = arith.addf %173, %176 : vector<8x1xf32>
    %178 = math.rsqrt %177 : vector<8x1xf32>
    %179 = vector.broadcast %178 : vector<8x1xf32> to vector<8x32xf32>
    %180 = arith.mulf %175, %179 : vector<8x32xf32>
    %181 = vector.broadcast %161 : vector<1x32xf32> to vector<8x32xf32>
    %182 = arith.mulf %180, %181 : vector<8x32xf32>
    %183 = vector.broadcast %162 : vector<1x32xf32> to vector<8x32xf32>
    %184 = arith.addf %182, %183 : vector<8x32xf32>
    %185 = vector.shape_cast %184 : vector<8x32xf32> to vector<1x8x32xf32>
    %c0_90 = arith.constant 0 : index
    %c0_91 = arith.constant 0 : index
    %c0_92 = arith.constant 0 : index
    %186 = vector.load %arg10[%c0_90, %c0_91, %c0_92] : memref<1x8x32xf32, #tpu.memory_space<vmem>>, vector<1x8x32xf32>
    tpu.vector_store %arg10[%c0_90, %c0_91, %c0_92], %185 {strides = array<i32>} : memref<1x8x32xf32, #tpu.memory_space<vmem>>, vector<1x8x32xf32>,
    return
  }
  func.func @transform_0(%arg0: i32) -> (i32, i32, i32) {
    %c0_i32 = arith.constant 0 : i32
    %c0_i32_0 = arith.constant 0 : i32
    %c0_i32_1 = arith.constant 0 : i32
    return %arg0, %c0_i32, %c0_i32_0 : i32, i32, i32
  }
  func.func @transform_1(%arg0: i32) -> (i32, i32, i32) {
    %c0_i32 = arith.constant 0 : i32
    %c0_i32_0 = arith.constant 0 : i32
    %c0_i32_1 = arith.constant 0 : i32
    return %arg0, %c0_i32, %c0_i32_0 : i32, i32, i32
  }
  func.func @transform_2(%arg0: i32) -> (i32, i32, i32) {
    %c0_i32 = arith.constant 0 : i32
    %c0_i32_0 = arith.constant 0 : i32
    %c0_i32_1 = arith.constant 0 : i32
    %c0_i32_2 = arith.constant 0 : i32
    return %c0_i32, %c0_i32_0, %c0_i32_1 : i32, i32, i32
  }
  func.func @transform_3(%arg0: i32) -> (i32, i32, i32) {
    %c0_i32 = arith.constant 0 : i32
    %c0_i32_0 = arith.constant 0 : i32
    %c0_i32_1 = arith.constant 0 : i32
    %c0_i32_2 = arith.constant 0 : i32
    return %c0_i32, %c0_i32_0, %c0_i32_1 : i32, i32, i32
  }
  func.func @transform_4(%arg0: i32) -> (i32, i32, i32) {
    %c0_i32 = arith.constant 0 : i32
    %c0_i32_0 = arith.constant 0 : i32
    %c0_i32_1 = arith.constant 0 : i32
    %c0_i32_2 = arith.constant 0 : i32
    return %c0_i32, %c0_i32_0, %c0_i32_1 : i32, i32, i32
  }
  func.func @transform_5(%arg0: i32) -> (i32, i32, i32) {
    %c0_i32 = arith.constant 0 : i32
    %c0_i32_0 = arith.constant 0 : i32
    %c0_i32_1 = arith.constant 0 : i32
    %c0_i32_2 = arith.constant 0 : i32
    return %c0_i32, %c0_i32_0, %c0_i32_1 : i32, i32, i32
  }
  func.func @transform_6(%arg0: i32) -> (i32, i32, i32) {
    %c0_i32 = arith.constant 0 : i32
    %c0_i32_0 = arith.constant 0 : i32
    %c0_i32_1 = arith.constant 0 : i32
    %c0_i32_2 = arith.constant 0 : i32
    return %c0_i32, %c0_i32_0, %c0_i32_1 : i32, i32, i32
  }
  func.func @transform_7(%arg0: i32) -> (i32, i32) {
    %c0_i32 = arith.constant 0 : i32
    %c0_i32_0 = arith.constant 0 : i32
    %c0_i32_1 = arith.constant 0 : i32
    return %c0_i32, %c0_i32_0 : i32, i32
  }
  func.func @transform_8(%arg0: i32) -> (i32, i32) {
    %c0_i32 = arith.constant 0 : i32
    %c0_i32_0 = arith.constant 0 : i32
    %c0_i32_1 = arith.constant 0 : i32
    return %c0_i32, %c0_i32_0 : i32, i32
  }
  func.func @transform_9(%arg0: i32) -> (i32, i32, i32) {
    %c0_i32 = arith.constant 0 : i32
    %c0_i32_0 = arith.constant 0 : i32
    %c0_i32_1 = arith.constant 0 : i32
    return %arg0, %c0_i32, %c0_i32_0 : i32, i32, i32
  }
}

</mosaic_0001>

<bundles_post_ra>
// kernel: tpu_custom_call.1
= control target key start
LH: loop header
LB: loop body
LE: loop exit
PB: predicated region body
PF: predicated region fallthrough
CT: control target
= control target key end

     0   :  { %s2322_s0 = inlined_call_operand.hbm [shape: f32[2,8,32], index: 0, kind: input, shape index: {}]   ;;  %s2323_s1 = inlined_call_operand.hbm [shape: f32[2,1,32], index: 1, kind: input, shape index: {}]   ;;  %s2324_s2 = inlined_call_operand.vmem [shape: f32[5,32,32], index: 2, kind: input, shape index: {}]   ;;  %s2325_s3 = inlined_call_operand.vmem [shape: f32[2,32,64], index: 3, kind: input, shape index: {}]   ;;  %s2326_s4 = inlined_call_operand.vmem [shape: f32[4,32,24], index: 4, kind: input, shape index: {}]   ;;  %s2327_s5 = inlined_call_operand.hbm [shape: f32[4,1,24], index: 5, kind: input, shape index: {}]   ;;  %s2328_s6 = inlined_call_operand.hbm [shape: f32[4,8,32], index: 6, kind: input, shape index: {}]   ;;  %s2329_s7 = inlined_call_operand.hbm [shape: f32[11,32], index: 7, kind: input, shape index: {}]   ;;  %s2330_s8 = inlined_call_operand.vmem [shape: f32[2,64], index: 8, kind: input, shape index: {}]   ;;  %s2331_s9 = inlined_call_operand.hbm [shape: f32[2,8,32], index: 9, kind: output, shape index: {}]  }
   0x1   :  { %2337 = sst [smem:[#allocation22_spill]] %s2327_s5 }
   0x2   :  { %2338 = sst [smem:[#allocation23_spill]] %s2328_s6 }
   0x3   :  { %2339 = sst [smem:[#allocation24_spill]] %s2329_s7 }
   0x4   :  { %14 = vsyncpa [#allocation3], 0 }
   0x5   :  { %16 = vsyncpa [#allocation3 + $0x1], 0 }
   0x6   :  { %17 = vsyncpa [#allocation6], 0 }
   0x7   :  { %19 = vsyncpa [#allocation6 + $0x1], 0 }
   0x8   :  { %20 = vsyncpa [#allocation9], 0 }
   0x9   :  { %21 = vsyncpa [#allocation4], 0 }
   0xa   :  { %23 = vsyncpa [#allocation4 + $0x1], 0  ;;  %s1902_s30 = smov 0   ;;  %s1904_s10 = smov 0  }
   0xb   :  { %s1906_s11 = smov 0   ;;  %s1908_s12 = smov 0  }
   0xc LB: > { %2340 = sst [smem:[#allocation17_spill]] %s1835_s11  ;;  %s1926_s16 = sadd.s32 4294967295, %s1839_s12   ;;  %s1839_s12 = sphi %s1908_s12, %s2358_s12   ;;  %s1835_s11 = sphi %s1906_s11, %s2360_s11   ;;  %s1831_s10 = sphi %s1904_s10, %s2362_s10   ;;  %s1827_s30 = sphi %s1902_s30, %s2361_s30  }
   0xd   : > { %2341 = sst [smem:[#allocation18_spill]] %s1839_s12  ;;  %p1392_p0 = scmp.ge.s32.totalorder %s1839_s12, 1 }
   0xe   : > { %s2342_s5 = sld [smem:[#allocation22_spill]]  ;;  %p50_p1 = scmp.eq.s32.totalorder %s1926_s16, 0 }
   0xf   : > { %p259_p2 = scmp.lt.s32.totalorder %s1839_s12, 3  ;;  %s1841_s18 = smov [#allocation7]  }
  0x10   : > { %s281_s19 = sshll.u32 %s1841_s18, 4  ;;  %s2344_s6 = sld [smem:[#allocation23_spill]]  ;;  %s282_s19 = int_to_ptr.vmem [resolvable:$true] %s281_s19 }
  0x11   : > { %p1931_p3 = pnand %p1392_p0, %p259_p2  ;;  %s1842_s24 = smov [#allocation8]  }
  0x12   : > { %s295_s25 = sshll.u32 %s1842_s24, 4  ;;  %s1843_s26 = smov 16   ;;  %s296_s25 = int_to_ptr.vmem [resolvable:$true] %s295_s25 }
  0x13   : > { %p1476_p4 = pneg %p1931_p3  ;;  %s1844_s27 = smov 1  }
  0x14   : > { %s279_s15 = sshll.u32 %s2342_s5, 4  ;;  %s1845_s28 = smov 128   ;;  %s280_s15 = int_to_ptr.hbm [resolvable:$true] %s279_s15 }
  0x15   : > { %p1943_p6 = pnand %p1476_p4, %p50_p1  ;;  %s1846_s29 = smov 8  }
  0x16   : > { %s293_s22 = sshll.u32 %s2344_s6, 4  ;;  %s2346_s7 = sld [smem:[#allocation24_spill]]  ;;  %s294_s22 = int_to_ptr.hbm [resolvable:$true] %s293_s22 }
  0x17   : > { %1479 = dma.hbm_to_vmem [thread:$0]  (!%p1943_p6), %s280_s15, 64, %s282_s19, [#allocation6], %s1843_s26, %s1843_s26, %s1844_s27  }
  0x18   : > { %1482 = dma.hbm_to_vmem [thread:$0]  (!%p1943_p6), %s294_s22, 512, %s296_s25, [#allocation9], %s1845_s28, %s1845_s28, %s1846_s29  }
  0x19   : > { %s1847_s20 = smov [#allocation10]   ;;  %s1391_s15 = sadd.s32 4294967294, %s1839_s12  }
  0x1a   : > { %s309_s21 = sshll.u32 %s1847_s20, 4  ;;  %s1958_s19 = sadd.s32 1, %s1839_s12   ;;  %s310_s21 = int_to_ptr.vmem [resolvable:$true] %s309_s21 }
  0x1b   : > { %2347 = sst [smem:[#allocation19_spill]] %s1958_s19  ;;  %s36_s24 = sadd.s32 1, %s1835_s11 }
  0x1c   : > { %s307_s18 = sshll.u32 %s2346_s7, 4  ;;  %s33_s22 = ssub.s32 %s1839_s12, %s1958_s19  ;;  %s308_s18 = int_to_ptr.hbm [resolvable:$true] %s307_s18 }
  0x1d   : > { %1485 = dma.hbm_to_vmem [thread:$0]  (!%p1943_p6), %s308_s18, 256, %s310_s21, [#allocation9], %s1845_s28, %s1845_s28, %s1846_s29  }
  0x1e   : > { %p43_p7 = scmp.ne.s32.totalorder %s1835_s11, %s1831_s10  ;;  %p34_p8 = scmp.eq.s32.totalorder %s33_s22, 0 }
  0x1f   : > { %p44_p9 = scmp.eq.s32.totalorder %s1839_s12, 0  ;;  %p49_p10 = scmp.ne.s32.totalorder %s1831_s10, %s1827_s30 }
  0x20   : > { %p246_p11 = scmp.eq.s32.totalorder %s1926_s16, 1  ;;  %p252_p2 = scmp.eq.s32.totalorder %s1391_s15, 1 }
  0x21   : > { %s1970_s25 = scalar_select %p34_p8, %s1835_s11, %s36_s24  }
  0x22   : > { %p1972_p12 = por %p44_p9, %p43_p7  ;;  %p1978_p13 = por %p50_p1, %p49_p10 }
  0x23   : > { %2348 = sst [smem:[#allocation20_spill]] %s1970_s25  ;;  %p1982_p0 = por %p246_p11, %p43_p7 }
  0x24   : > { %p1500_p4 = scmp.lt.s32.totalorder %s1839_s12, 2  ;;  %s1988_s28 = sand.u32 1, %s1835_s11  }
  0x25   : > { %p1990_p6 = por %p252_p2, %p49_p10  ;;  %s1397_s13 = sshll.u32 %s1988_s28, 3 }
  0x26   : > { %s1398_s14 = sshll.u32 %s1839_s12, 3  ;;  %s330_s22 = scalar_lea.vmem [#allocation2], %s1397_s13 }
  0x27   : > { %s2352_s29 = scalar_select %p1990_p6, 1, 0 }
  0x28   : > { %s334_s21 = scalar_lea.hbm %s2322_s0, %s1398_s14  ;;  %s338_s5 = sshll.u32 %s330_s22, 4  ;;  %s339_s5 = int_to_ptr.vmem [resolvable:$true] %s338_s5 }
  0x29   : > { %2353 = sst [smem:[#allocation21_spill]] %s2352_s29  ;;  %s336_s24 = sshll.u32 %s334_s21, 4  ;;  %s337_s24 = int_to_ptr.hbm [resolvable:$true] %s336_s24 }
  0x2a   : > { %p2001_p7 = pnand %p1500_p4, %p1972_p12  ;;  %s345_s6 = sand.u32 1, %s1839_s12  }
  0x2b   : > { %s351_s11 = scalar_lea.hbm %s2323_s1, %s1839_s12  ;;  %s327_s19 = scalar_lea.sflag [#allocation3], %s1988_s28 }
  0x2c   : > { %s1701_s18 = sshra.s32 %s337_s24, 4  ;;  %p1705_p9 = pneg %p2001_p7  ;;  %s1702_s18 = int_to_ptr.hbm [resolvable:$true] %s1701_s18 }
  0x2d   : > { %s1703_s14 = scalar_lea.hbm %s1702_s18, 8  ;;  %s1708_s20 = scalar_lea.hbm %s2322_s0, 16 }
  0x2e   : > { %p1704_p8 = scmp.ne.s32.totalorder %s1702_s18, %s1703_s14  ;;  %p1709_p12 = scmp.lt.s32.totalorder %s1702_s18, %s2322_s0 }
  0x2f   : > { %p1710_p2 = scmp.lt.s32.totalorder %s1708_s20, %s1703_s14 }
  0x30   : > { %p1706_p10 = pnand %p1705_p9, %p1704_p8 }
  0x31   : > { %p1711_p4 = por %p1710_p2, %p1709_p12 }
  0x32   : > { %p1707_p11 = pneg %p1706_p10 }
  0x34   : > { %p1712_p5 = pnand %p1711_p4, %p1707_p11 }
  0x36   : > { %1715 = shalt.err (!%p1712_p5)
}
  0x37   : > { %1489 = dma.hbm_to_vmem [thread:$0]  (!%p2001_p7), %s337_s24, 128, %s339_s5, %s327_s19  }
  0x38   : > { %s353_s7 = sshll.u32 %s351_s11, 4  ;;  %s348_s25 = scalar_lea.vmem [#allocation5], %s1988_s28  ;;  %s354_s7 = int_to_ptr.hbm [resolvable:$true] %s353_s7 }
  0x39   : > { %s355_s12 = sshll.u32 %s348_s25, 4  ;;  %s346_s26 = scalar_lea.sflag [#allocation6], %s345_s6  ;;  %s356_s12 = int_to_ptr.vmem [resolvable:$true] %s355_s12 }
  0x3a   : > { %s1731_s13 = sshra.s32 %s354_s7, 4  ;;  %s1738_s20 = scalar_lea.hbm %s2323_s1, 2  ;;  %s1732_s13 = int_to_ptr.hbm [resolvable:$true] %s1731_s13 }
  0x3b   : > { %s1733_s29 = scalar_lea.hbm %s1732_s13, 1  ;;  %p1739_p5 = scmp.lt.s32.totalorder %s1732_s13, %s2323_s1 }
  0x3c   : > { %p1734_p8 = scmp.ne.s32.totalorder %s1732_s13, %s1733_s29  ;;  %p1740_p12 = scmp.lt.s32.totalorder %s1738_s20, %s1733_s29 }
  0x3e   : > { %p1736_p10 = pnand %p1734_p8, %p1705_p9  ;;  %p1741_p2 = por %p1740_p12, %p1739_p5 }
  0x40   : > { %p1737_p11 = pneg %p1736_p10 }
  0x42   : > { %p1742_p4 = pnand %p1741_p2, %p1737_p11 }
  0x44   : > { %1745 = shalt.err (!%p1742_p4)
}
  0x45   : > { %1492 = dma.hbm_to_vmem [thread:$0]  (!%p2001_p7), %s354_s7, 16, %s356_s12, %s346_s26  }
  0x46   : > { %364 = sbr.rel (%p1931_p3) target bundleno = 2843 (0xb1b), region = 56  ;;  %s2039_s6 = sand.u32 (!%p1931_p3), 1, %s1831_s10  }
  0x47   : > { %s1400_s11 = sshll.u32 (!%p1931_p3), %s2039_s6, 3  ;;  %s367_s19 = scalar_lea.sflag (!%p1931_p3), [#allocation3], %s2039_s6 }
  0x48   : > { %s370_s28 = scalar_lea.vmem (!%p1931_p3), [#allocation2], %s1400_s11 }
  0x4b   : > { %1806 = dma.done.wait (%p1978_p13), %s367_s19, 128  }
  0x4c   : > { %1808 = vsyncadd (%p1978_p13), %s367_s19, 4294967168  ;;  %s376_s12 = sand.u32 1, %s1926_s16   ;;  %s379_s29 = scalar_lea.vmem [#allocation5], %s2039_s6 }
  0x4d   : > { %s377_s17 = scalar_lea.sflag [#allocation6], %s376_s12 }
  0x4e   : > { %1810 = dma.done.wait (%p1978_p13), %s377_s17, 16  }
  0x4f   : > { %1812 = vsyncadd (%p1978_p13), %s377_s17, 4294967280 }
  0x50   : > { %1814 = dma.done.wait (%p50_p1), [#allocation6], 64  }
  0x51   : > { %1816 = vsyncadd (%p50_p1), [#allocation6], 4294967232 }
  0x52   : > { %1818 = dma.done.wait (%p50_p1), [#allocation9], 768  }
  0x53   : > { %1820 = vsyncadd (%p50_p1), [#allocation9], 4294966528  ;;  %v439_v0 = vld [vmem:[%s2324_s2 + $0x18] sm:$0xff]  ;;  %v438_v2 = vld [vmem:[%s2324_s2 + $0x10] sm:$0xff]  ;;  %vm440_vm0 = vcmask 261120   ;;  %s1848_s24 = smov 96  }
  0x54   : > { %v1409_v1 = vld [vmem:[%s2324_s2 + $0x38] sm:$0xff]  ;;  %456 = vmatpush.msra.mxu0 %v439_v0  ;;  %v1408_v3 = vld [vmem:[%s2324_s2 + $0x30] sm:$0xff]  ;;  %v437_v4 = vld [vmem:[%s2324_s2 + $0x8] sm:$0xff]  ;;  %v1849_v44 = vmov 32.0   ;;  %s1850_s12 = smov 120   ;;  %vm733_vm6 = vcmask 64512  }
  0x55   : > { %486 = vmatpush.msra.mxu1 %v1409_v1  ;;  %v1407_v5 = vld [vmem:[%s2324_s2 + $0x28] sm:$0xff]  ;;  %v436_v6 = vld [vmem:[%s2324_s2] sm:$0xff]  ;;  %v1415_v10 = vld [vmem:[%s2324_s2 + $0x58] sm:$0xff]  ;;  %s1851_s17 = smov 112   ;;  %s433_s21 = scalar_lea.vmem [#allocation11], %s1400_s11 }
  0x56   : > { %v1406_v7 = vld [vmem:[%s2324_s2 + $0x20] sm:$0xff]  ;;  %457 = vmatpush.msra.mxu0 %v438_v2  ;;  %v1414_v11 = vld [vmem:[%s2324_s2 + $0x50] sm:$0xff]  ;;  %524 = vmatpush.msra.mxu2 %v1415_v10  ;;  %v1413_v12 = vld [vmem:[%s2324_s2 + $0x48] sm:$0xff]  ;;  %s1271_s5 = sshll.u32 %s433_s21, 4  ;;  %s1781_s11 = scalar_lea.hbm %s2331_s9, 16  ;;  %s1272_s5 = int_to_ptr.vmem [resolvable:$true] %s1271_s5 }
  0x57   : > { %487 = vmatpush.msra.mxu1 %v1408_v3  ;;  %v435_v8 = vld [vmem:[%s379_s29] sm:$0x1]  ;;  %v535_v14 = vld [vmem:[%s2325_s3 + $0x18] sm:$0xff]  ;;  %v534_v15 = vld [vmem:[%s2325_s3 + $0x10] sm:$0xff] }
  0x58   : > { %v434_v9 = vld [vmem:[%s370_s28] sm:$0xff]  ;;  %458 = vmatpush.msra.mxu0 %v437_v4  ;;  %525 = vmatpush.msra.mxu2 %v1414_v11  ;;  %v1558_v16 = vld [vmem:[#allocation10] ss:$0 sm:$0xff]  ;;  %v1559_v29 = vld [vmem:[#allocation10 + $0x1] ss:$0 sm:$0xff] }
  0x59   : > { %488 = vmatpush.msra.mxu1 %v1407_v5  ;;  %v1412_v13 = vld [vmem:[%s2324_s2 + $0x40] sm:$0xff]  ;;  %553 = vmatpush.msra.mxu3 %v535_v14  ;;  %v533_v27 = vld [vmem:[%s2325_s3 + $0x8] sm:$0xff]  ;;  %v610_v56 = vld [vmem:[%s2326_s4 + $0x18] sm:$0xff] }
  0x5a   : > { %459 = vmatpush.msra.mxu0 %v436_v6  ;;  %526 = vmatpush.msra.mxu2 %v1413_v12  ;;  %v532_v28 = vld [vmem:[%s2325_s3] sm:$0xff]  ;;  %v614_v57 = vld [vmem:[%s2326_s4 + $0x38] sm:$0xff]  ;;  %v609_v60 = vld [vmem:[%s2326_s4 + $0x10] sm:$0xff] }
  0x5b   : > { %489 = vmatpush.msra.mxu1 %v1406_v7  ;;  %1405 = vmatmul.msk.f32.vlgmr.msra.gmra.mxu0 %vm440_vm0, %v435_v8  ;;  %v1560_v32 = vld [vmem:[%s2330_s8] ss:$0 sm:$0xff]  ;;  %v618_v58 = vld [vmem:[%s2326_s4 + $0x58] sm:$0xff]  ;;  %v613_v61 = vld [vmem:[%s2326_s4 + $0x30] sm:$0xff] }
  0x5c   : > { %1410 = vmatmul.msk.f32.vlgmr.msra.gmra.mxu1 %vm440_vm0, %v434_v9  ;;  %527 = vmatpush.msra.mxu2 %v1412_v13  ;;  %v622_v59 = vld [vmem:[%s2326_s4 + $0x78] sm:$0xff]  ;;  %v617_v62 = vld [vmem:[%s2326_s4 + $0x50] sm:$0xff]  ;;  %v608_v0 = vld [vmem:[%s2326_s4 + $0x8] sm:$0xff] }
  0x5d   : > { %554 = vmatpush.msra.mxu3 %v534_v15  ;;  %658 = vmatpush.msrb.mxu0 %v610_v56  ;;  %v621_v63 = vld [vmem:[%s2326_s4 + $0x70] sm:$0xff]  ;;  %v612_v1 = vld [vmem:[%s2326_s4 + $0x28] sm:$0xff]  ;;  %v607_v4 = vld [vmem:[%s2326_s4] sm:$0xff] }
  0x5e   : > { %678 = vmatpush.msrb.mxu1 %v614_v57  ;;  %698 = vmatpush.msrb.mxu2 %v618_v58  ;;  %v616_v2 = vld [vmem:[%s2326_s4 + $0x48] sm:$0xff]  ;;  %v611_v5 = vld [vmem:[%s2326_s4 + $0x20] sm:$0xff] }
  0x5f   : > { %555 = vmatpush.msra.mxu3 %v533_v27  ;;  %659 = vmatpush.msrb.mxu0 %v609_v60  ;;  %v620_v3 = vld [vmem:[%s2326_s4 + $0x68] sm:$0xff]  ;;  %v615_v6 = vld [vmem:[%s2326_s4 + $0x40] sm:$0xff] }
  0x60   : > { %679 = vmatpush.msrb.mxu1 %v613_v61  ;;  %699 = vmatpush.msrb.mxu2 %v617_v62  ;;  %v619_v7 = vld [vmem:[%s2326_s4 + $0x60] sm:$0xff] }
  0x61   : > { %556 = vmatpush.msra.mxu3 %v532_v28  ;;  %660 = vmatpush.msrb.mxu0 %v608_v0 }
  0x62   : > { %680 = vmatpush.msrb.mxu1 %v612_v1  ;;  %700 = vmatpush.msrb.mxu2 %v616_v2 }
  0x63   : > { %718 = vmatpush.msrb.mxu3 %v622_v59  ;;  %661 = vmatpush.msrb.mxu0 %v607_v4 }
  0x64   : > { %681 = vmatpush.msrb.mxu1 %v611_v5  ;;  %701 = vmatpush.msrb.mxu2 %v615_v6 }
  0x65   : > { %719 = vmatpush.msrb.mxu3 %v621_v63 }
  0x67   : > { %720 = vmatpush.msrb.mxu3 %v620_v3 }
  0x69   : > { %721 = vmatpush.msrb.mxu3 %v619_v7 }
  0xd8   : > { %v461_v17 = vpop.f32.mrf.mxu0 }
  0xd9   : > { %v491_v18 = vpop.f32.mrf.mxu1  ;;  %v494_v19 = vperm.slane %v461_v17, 0  ;;  %v1561_v17 = vld [vmem:[#allocation10 + $0x2] ss:$0 sm:$0xff] }
  0xda   : > { %v492_v20 = vadd.f32 %v1558_v16, %v491_v18 }
  0xdc   : > { %v495_v21 = vadd.f32 %v494_v19, %v492_v20  ;;  %v1562_v20 = vld [vmem:[#allocation10 + $0x3] ss:$0 sm:$0xff] }
  0xde   : > { %v497_v22 = vmin.f32 %v495_v21, 0.0  ;;  %vm496_vm1 = vcmp.gt.f32.partialorder %v495_v21, 0.0 }
  0xe0   : > { %v498_v23 = vmul.f32 1.442695, %v497_v22 }
  0xe2   : > { %1575 = vpow2.f32 %v498_v23  ;;  %v1563_v23 = vld [vmem:[#allocation7] ss:$0 sm:$0xff] }
  0xe8   : > { %v1576_v24 = vpop.eup %1575 }
  0xe9   : > { %v1411_v25 = vadd.f32 -1.0, %v1576_v24  ;;  %v1564_v24 = vld [vmem:[#allocation7 + $0x1] ss:$0 sm:$0xff] }
  0xeb   : > { %v501_v26 = vsel %vm496_vm1, %v495_v21, %v1411_v25 }
  0xec   : > { %1416 = vmatmul.msk.f32.vlgmr.msra.gmra.mxu2 %vm440_vm0, %v501_v26 }
 0x16f   : > { %v529_v30 = vpop.f32.mrf.mxu2 }
 0x170   : > { %v530_v31 = vadd.f32 %v1559_v29, %v529_v30  ;;  %v1565_v30 = vld [vmem:[#allocation7 + $0x2] ss:$0 sm:$0xff] }
 0x172   : > { %1417 = vmatmul.msk.f32.vlgmr.msra.gmra.mxu3 %vm440_vm0, %v530_v31  ;;  %v1566_v31 = vld [vmem:[#allocation7 + $0x3] ss:$0 sm:$0xff] }
 0x1f5   : > { %v558_v33 = vpop.f32.mrf.mxu3 }
 0x1f6   : > { %v559_v34 = vadd.f32 %v1560_v32, %v558_v33 }
 0x1f8   : > { %567 = vrot.lane.b32.xlu0 %v559_v34, %s1848_s24  ;;  %v561_v35 = vsub.f32 0.0, %v559_v34 }
 0x1fa   : > { %v562_v36 = vmul.f32 1.442695, %v561_v35 }
 0x1fc   : > { %1577 = vpow2.f32 %v562_v36 }
 0x202   : > { %v1578_v37 = vpop.eup %1577 }
 0x203   : > { %v564_v38 = vadd.f32 1.0, %v1578_v37 }
 0x205   : > { %1579 = vrcp.f32 %v564_v38 }
 0x206   : > { %1581 = vrcp.f32 %v1849_v44 }
 0x20b   : > { %v1580_v39 = vpop.eup %1579 }
 0x20c   : > { %v1582_v45 = vpop.eup %1581 }
 0x20d   : > { %v578_v46 = vmul.f32 32.0, %v1582_v45  ;;  %vm582_vm2 = vweird.f32 %v1582_v45 }
 0x20f   : > { %v579_v47 = vsub.f32 1.0, %v578_v46 }
 0x211   : > { %v580_v48 = vmul.f32 %v1582_v45, %v579_v47 }
 0x213   : > { %v581_v49 = vadd.f32 %v1582_v45, %v580_v48 }
 0x215   : > { %v2120_v50 = vsel %vm582_vm2, %v1582_v45, %v581_v49 }
 0x26a   : > { %v568_v40 = vpop.permute.xlu0 %567 }
 0x26b   : > { %v570_v41 = vmul.f32 %v1580_v39, %v568_v40 }
 0x26d   : > { %v571_v42 = vadd.f32 %v570_v41, %v434_v9 }
 0x26f   : > { %v574_v43 = vsel %vm440_vm0, %v571_v42, 0.0 }
 0x270   : > { %575 = vadd.xlane.f32.xlu0 %v574_v43 }
 0x2e3   : > { %v576_v51 = vpop.xlane.xlu0 %575 }
 0x2e4   : > { %v584_v52 = vmul.f32 %v2120_v50, %v576_v51 }
 0x2e6   : > { %v585_v53 = vsub.f32 %v571_v42, %v584_v52 }
 0x2e8   : > { %v586_v54 = vmul.f32 %v585_v53, %v585_v53 }
 0x2ea   : > { %v587_v55 = vsel %vm440_vm0, %v586_v54, 0.0 }
 0x2eb   : > { %588 = vadd.xlane.f32.xlu1 %v587_v55 }
 0x35e   : > { %v589_v8 = vpop.xlane.xlu1 %588 }
 0x35f   : > { %v590_v9 = vmul.f32 %v589_v8, %v2120_v50 }
 0x361   : > { %v591_v10 = vadd.f32 1e-05, %v590_v9 }
 0x363   : > { %1583 = vrsqrt.f32 %v591_v10  ;;  %vm598_vm4 = vweird.f32 %v591_v10 }
 0x369   : > { %v1584_v11 = vpop.eup %1583 }
 0x36a   : > { %v593_v12 = vmul.f32 %v1584_v11, %v591_v10  ;;  %vm599_vm3 = vweird.f32 %v1584_v11 }
 0x36b   : > { %vm600_vm5 = vmor %vm598_vm4, %vm599_vm3 }
 0x36c   : > { %v594_v13 = vmul.f32 %v1584_v11, %v593_v12 }
 0x36e   : > { %v595_v14 = vmul.f32 0.5, %v594_v13 }
 0x370   : > { %v596_v15 = vsub.f32 1.5, %v595_v14 }
 0x372   : > { %v597_v16 = vmul.f32 %v1584_v11, %v596_v15 }
 0x374   : > { %v601_v18 = vsel %vm600_vm5, %v1584_v11, %v597_v16 }
 0x375   : > { %v602_v19 = vmul.f32 %v601_v18, %v585_v53 }
 0x377   : > { %v604_v21 = vmul.f32 %v1561_v17, %v602_v19 }
 0x379   : > { %v2173_v22 = vadd.f32 %v1562_v20, %v604_v21 }
 0x37b   : > { %1418 = vmatmul.msk.f32.vlgmr.msrb.gmra.mxu0 %vm440_vm0, %v2173_v22  ;;  %1419 = vmatmul.msk.f32.vlgmr.msrb.gmra.mxu1 %vm440_vm0, %v2173_v22 }
 0x37c   : > { %1420 = vmatmul.msk.f32.vlgmr.msrb.gmra.mxu2 %vm440_vm0, %v2173_v22  ;;  %1421 = vmatmul.msk.f32.vlgmr.msrb.gmra.mxu3 %vm440_vm0, %v2173_v22 }
 0x3f8   : > { %v663_v25 = vpop.f32.mrf.mxu0  ;;  %v683_v26 = vpop.f32.mrf.mxu1 }
 0x3f9   : > { %v2183_v27 = vadd.f32 %v1563_v23, %v663_v25  ;;  %v2185_v28 = vadd.f32 %v1564_v24, %v683_v26 }
 0x3fb   : > { %v1553_v29 = vpack.i.bf16 %v2185_v28, %v2183_v27  ;;  %v726_v40 = vmul.f32 0.35355338, %v2183_v27  ;;  %v727_v42 = vmul.f32 0.35355338, %v2185_v28 }
 0x3ff   : > { %v703_v32 = vpop.f32.mrf.mxu2  ;;  %v723_v33 = vpop.f32.mrf.mxu3 }
 0x400   : > { %v2189_v34 = vadd.f32 %v1565_v30, %v703_v32  ;;  %v2191_v35 = vadd.f32 %v1566_v31, %v723_v33  ;;  %v628_v30 = vld [vmem:[#allocation8 + $0x8] sm:$0xff]  ;;  %v629_v31 = vld [vmem:[#allocation8 + $0x10] sm:$0xff]  ;;  %v630_v32 = vld [vmem:[#allocation8 + $0x18] sm:$0xff] }
 0x402   : > { %816 = vrot.lane.b32.xlu2 %v2191_v35, %s1850_s12  ;;  %788 = vrot.lane.b32.xlu1 %v2189_v34, %s1850_s12  ;;  %v1548_v36 = vpack.i.bf16 %v2191_v35, %v2189_v34  ;;  %v729_v38 = vmul.f32 0.35355338, %v2191_v35  ;;  %v728_v44 = vmul.f32 0.35355338, %v2189_v34 }
 0x40a   : > { %731 = vrot.lane.b32.xlu2 %v2183_v27, %s1850_s12 }
 0x412   : > { %760 = vrot.lane.b32.xlu2 %v2185_v28, %s1850_s12 }
 0x45c   : > { %v817_v37 = vpop.permute.xlu2 %816 }
 0x45d   : > { %1428 = vmatpush.xpose.msk.msra.mxu3 %vm733_vm6, %v817_v37 }
 0x460   : > { %1429 = vmatmul.msk.f32.vlgmr.msra.gmra.mxu3 %vm733_vm6, %v729_v38 }
 0x464   : > { %v732_v39 = vpop.permute.xlu2 %731 }
 0x465   : > { %1422 = vmatpush.xpose.msk.msra.mxu0 %vm733_vm6, %v732_v39 }
 0x468   : > { %1423 = vmatmul.msk.f32.vlgmr.msra.gmra.mxu0 %vm733_vm6, %v726_v40 }
 0x46c   : > { %v761_v41 = vpop.permute.xlu2 %760 }
 0x46d   : > { %1424 = vmatpush.xpose.msk.msra.mxu1 %vm733_vm6, %v761_v41 }
 0x470   : > { %1425 = vmatmul.msk.f32.vlgmr.msra.gmra.mxu1 %vm733_vm6, %v727_v42 }
 0x474   : > { %v789_v43 = vpop.permute.xlu1 %788 }
 0x475   : > { %1426 = vmatpush.xpose.msk.msra.mxu2 %vm733_vm6, %v789_v43 }
 0x478   : > { %1427 = vmatmul.msk.f32.vlgmr.msra.gmra.mxu2 %vm733_vm6, %v728_v44 }
 0x4e3   : > { %v840_v45 = vpop.f32.mrf.mxu3 }
 0x4e4   : > { %v852_v46 = vsel %vm733_vm6, %v840_v45, -inf }
 0x4e5   : > { %853 = vmax.xlane.f32.xlu1 %v852_v46  ;;  %v756_v47 = vpop.f32.mrf.mxu0  ;;  %v1567_v46 = vld [vmem:[#allocation10 + $0x4] ss:$0 sm:$0xff] }
 0x4e6   : > { %v843_v48 = vsel %vm733_vm6, %v756_v47, -inf }
 0x4e7   : > { %844 = vmax.xlane.f32.xlu0 %v843_v48 }
 0x4ed   : > { %v784_v49 = vpop.f32.mrf.mxu1 }
 0x4ee   : > { %v846_v51 = vsel %vm733_vm6, %v784_v49, -inf }
 0x4ef   : > { %847 = vmax.xlane.f32.xlu0 %v846_v51 }
 0x4fb   : > { %v812_v52 = vpop.f32.mrf.mxu2 }
 0x4fc   : > { %v849_v53 = vsel %vm733_vm6, %v812_v52, -inf }
 0x4fd   : > { %850 = vmax.xlane.f32.xlu2 %v849_v53 }
 0x558   : > { %v854_v54 = vpop.xlane.xlu1 %853 }
 0x559   : > { %v858_v57 = vsub.f32 %v840_v45, %v854_v54 }
 0x55a   : > { %v845_v55 = vpop.xlane.xlu0 %844 }
 0x55b   : > { %v855_v56 = vsub.f32 %v756_v47, %v845_v55  ;;  %v865_v59 = vmul.f32 1.442695, %v858_v57 }
 0x55d   : > { %v859_v58 = vmul.f32 1.442695, %v855_v56 }
 0x55f   : > { %1585 = vpow2.f32 %v859_v58  ;;  %v1441_v58 = vld [vmem:[%s2324_s2 + $0x78] sm:$0xff] }
 0x560   : > { %1587 = vpow2.f32 %v865_v59  ;;  %v1439_v59 = vld [vmem:[%s2324_s2 + $0x68] sm:$0xff] }
 0x562   : > { %v848_v60 = vpop.xlane.xlu0 %847 }
 0x563   : > { %v856_v61 = vsub.f32 %v784_v49, %v848_v60  ;;  %v1438_v60 = vld [vmem:[%s2324_s2 + $0x60] sm:$0xff] }
 0x565   : > { %v1586_v62 = vpop.eup %1585  ;;  %v861_v63 = vmul.f32 1.442695, %v856_v61 }
 0x566   : > { %v867_v0 = vsel %vm733_vm6, %v1586_v62, 0.0  ;;  %v1588_v1 = vpop.eup %1587 }
 0x567   : > { %1589 = vpow2.f32 %v861_v63  ;;  %868 = vadd.xlane.f32.xlu0 %v867_v0  ;;  %v876_v3 = vsel %vm733_vm6, %v1588_v1, 0.0 }
 0x56d   : > { %v1590_v2 = vpop.eup %1589 }
 0x56e   : > { %v870_v4 = vsel %vm733_vm6, %v1590_v2, 0.0 }
 0x56f   : > { %877 = vadd.xlane.f32.xlu0 %v876_v3  ;;  %871 = vadd.xlane.f32.xlu1 %v870_v4 }
 0x570   : > { %v851_v5 = vpop.xlane.xlu2 %850 }
 0x571   : > { %v857_v6 = vsub.f32 %v812_v52, %v851_v5 }
 0x573   : > { %v863_v7 = vmul.f32 1.442695, %v857_v6  ;;  %v1568_v6 = vld [vmem:[#allocation10 + $0x5] ss:$0 sm:$0xff] }
 0x575   : > { %1591 = vpow2.f32 %v863_v7 }
 0x57b   : > { %v1592_v8 = vpop.eup %1591 }
 0x57c   : > { %v873_v9 = vsel %vm733_vm6, %v1592_v8, 0.0 }
 0x57d   : > { %874 = vadd.xlane.f32.xlu2 %v873_v9  ;;  %v1569_v9 = vld [vmem:[#allocation10 + $0x6] ss:$0 sm:$0xff] }
 0x583   : > { %1554 = vrot.lane.b32.xlu0 %v1553_v29, %s1851_s17  ;;  %v627_v29 = vld [vmem:[#allocation8] sm:$0xff] }
 0x595   : > { %1549 = vrot.lane.b32.xlu2 %v1548_v36, %s1851_s17 }
 0x5da   : > { %v869_v10 = vpop.xlane.xlu0 %868 }
 0x5db   : > { %1593 = vrcp.f32 %v869_v10 }
 0x5e1   : > { %v1594_v14 = vpop.eup %1593 }
 0x5e2   : > { %v872_v11 = vpop.xlane.xlu1 %871  ;;  %v878_v12 = vpop.xlane.xlu0 %877  ;;  %v883_v21 = vmul.f32 %v1594_v14, %v1586_v62  ;;  %v1445_v14 = vld [vmem:[%s2324_s2 + $0x88] sm:$0xff] }
 0x5e3   : > { %1595 = vrcp.f32 %v872_v11 }
 0x5e4   : > { %1597 = vrcp.f32 %v878_v12  ;;  %v1447_v12 = vld [vmem:[%s2324_s2 + $0x98] sm:$0xff] }
 0x5e9   : > { %v1596_v15 = vpop.eup %1595 }
 0x5ea   : > { %v1598_v17 = vpop.eup %1597  ;;  %v884_v23 = vmul.f32 %v1596_v15, %v1590_v2  ;;  %v1444_v15 = vld [vmem:[%s2324_s2 + $0x80] sm:$0xff] }
 0x5eb   : > { %v886_v27 = vmul.f32 %v1598_v17, %v1588_v1  ;;  %v1451_v17 = vld [vmem:[%s2325_s3 + $0x30] sm:$0xff] }
 0x5f0   : > { %v875_v13 = vpop.xlane.xlu2 %874 }
 0x5f1   : > { %1599 = vrcp.f32 %v875_v13  ;;  %v1446_v13 = vld [vmem:[%s2324_s2 + $0x90] sm:$0xff] }
 0x5f5   : > { %v1555_v16 = vpop.permute.xlu0 %1554 }
 0x5f6   : > { %v1557_v18 = vunpack.i.h.bf16 %v1555_v16  ;;  %v1556_v19 = vunpack.i.l.bf16 %v1555_v16  ;;  %v1452_v16 = vld [vmem:[%s2325_s3 + $0x38] sm:$0xff] }
 0x5f7   : > { %v1600_v20 = vpop.eup %1599 }
 0x5f8   : > { %v1550_v24 = vpop.permute.xlu2 %1549  ;;  %908 = vmatpush.msrb.mxu0 %v1556_v19  ;;  %934 = vmatpush.msrb.mxu1 %v1557_v18  ;;  %v885_v28 = vmul.f32 %v1600_v20, %v1592_v8  ;;  %v1570_v18 = vld [vmem:[#allocation10 + $0x7] ss:$0 sm:$0xff] }
 0x5f9   : > { %v1552_v25 = vunpack.i.h.bf16 %v1550_v24  ;;  %v1551_v26 = vunpack.i.l.bf16 %v1550_v24  ;;  %1430 = vmatmul.msk.f32.vlgmr.msrb.gmra.mxu0 %vm733_vm6, %v883_v21  ;;  %1431 = vmatmul.msk.f32.vlgmr.msrb.gmra.mxu1 %vm733_vm6, %v884_v23 }
 0x5fa   : > { %1009 = vmatpush.msra.mxu0 %v627_v29  ;;  %1032 = vmatpush.msra.mxu1 %v628_v30  ;;  %v1571_v29 = vld [vmem:[#allocation10 + $0x8] ss:$0 sm:$0xff] }
 0x5fb   : > { %960 = vmatpush.msrb.mxu2 %v1551_v26  ;;  %986 = vmatpush.msrb.mxu3 %v1552_v25 }
 0x5fc   : > { %1432 = vmatmul.msk.f32.vlgmr.msrb.gmra.mxu2 %vm733_vm6, %v885_v28  ;;  %1433 = vmatmul.msk.f32.vlgmr.msrb.gmra.mxu3 %vm733_vm6, %v886_v27  ;;  %v1450_v27 = vld [vmem:[%s2325_s3 + $0x28] sm:$0xff]  ;;  %v1449_v28 = vld [vmem:[%s2325_s3 + $0x20] sm:$0xff] }
 0x5fd   : > { %1055 = vmatpush.msra.mxu2 %v629_v31  ;;  %1078 = vmatpush.msra.mxu3 %v630_v32  ;;  %v1572_v32 = vld [vmem:[%s2330_s8 + $0x1] ss:$0 sm:$0xff] }
 0x5fe   : > { %1144 = vmatpush.msrb.mxu0 %v1441_v58  ;;  %1180 = vmatpush.msrb.mxu1 %v1447_v12 }
 0x5ff   : > { %1210 = vmatpush.msrb.mxu2 %v1452_v16 }
 0x600   : > { %1181 = vmatpush.msrb.mxu1 %v1446_v13 }
 0x601   : > { %1211 = vmatpush.msrb.mxu2 %v1451_v17 }
 0x602   : > { %1182 = vmatpush.msrb.mxu1 %v1445_v14 }
 0x603   : > { %1212 = vmatpush.msrb.mxu2 %v1450_v27 }
 0x604   : > { %1183 = vmatpush.msrb.mxu1 %v1444_v15 }
 0x605   : > { %1213 = vmatpush.msrb.mxu2 %v1449_v28 }
 0x676   : > { %v910_v33 = vpop.f32.mrf.mxu0  ;;  %v936_v34 = vpop.f32.mrf.mxu1 }
 0x677   : > { %1434 = vmatmul.msk.f32.vlgmr.msra.gmra.mxu0 %vm733_vm6, %v910_v33  ;;  %1435 = vmatmul.msk.f32.vlgmr.msra.gmra.mxu1 %vm733_vm6, %v936_v34 }
 0x67f   : > { %v962_v35 = vpop.f32.mrf.mxu2  ;;  %v988_v36 = vpop.f32.mrf.mxu3 }
 0x680   : > { %1436 = vmatmul.msk.f32.vlgmr.msra.gmra.mxu2 %vm733_vm6, %v962_v35  ;;  %1437 = vmatmul.msk.f32.vlgmr.msra.gmra.mxu3 %vm733_vm6, %v988_v36 }
 0x6f4   : > { %v1011_v37 = vpop.f32.mrf.mxu0  ;;  %v1034_v38 = vpop.f32.mrf.mxu1 }
 0x6f5   : > { %v1083_v39 = vsel %vm440_vm0, %v1011_v37, 0.0  ;;  %v1084_v40 = vsel %vm440_vm0, %v1034_v38, 0.0 }
 0x6f6   : > { %v1085_v41 = vadd.f32 %v1084_v40, %v1083_v39 }
 0x703   : > { %v1057_v42 = vpop.f32.mrf.mxu2  ;;  %v1080_v43 = vpop.f32.mrf.mxu3 }
 0x704   : > { %v1086_v44 = vsel %vm440_vm0, %v1057_v42, 0.0  ;;  %v1088_v47 = vsel %vm440_vm0, %v1080_v43, 0.0 }
 0x705   : > { %v1087_v45 = vadd.f32 %v1086_v44, %v1085_v41 }
 0x707   : > { %v1089_v48 = vadd.f32 %v1088_v47, %v1087_v45 }
 0x709   : > { %v1092_v49 = vadd.f32 %v1567_v46, %v1089_v48 }
 0x70b   : > { %v1093_v51 = vadd.f32 %v1092_v49, %v2173_v22  ;;  %v1440_v22 = vld [vmem:[%s2324_s2 + $0x70] sm:$0xff] }
 0x70c   : > { %1145 = vmatpush.msrb.mxu0 %v1440_v22  ;;  %v1573_v22 = vld [vmem:[#allocation10 + $0x9] ss:$0 sm:$0xff] }
 0x70d   : > { %v1096_v52 = vsel %vm440_vm0, %v1093_v51, 0.0 }
 0x70e   : > { %1097 = vadd.xlane.f32.xlu1 %v1096_v52  ;;  %1146 = vmatpush.msrb.mxu0 %v1439_v59 }
 0x710   : > { %1147 = vmatpush.msrb.mxu0 %v1438_v60  ;;  %v1574_v60 = vld [vmem:[#allocation10 + $0xa] ss:$0 sm:$0xff] }
 0x781   : > { %v1098_v53 = vpop.xlane.xlu1 %1097 }
 0x782   : > { %v1099_v54 = vmul.f32 %v1098_v53, %v2120_v50 }
 0x784   : > { %v1100_v55 = vsub.f32 %v1093_v51, %v1099_v54 }
 0x786   : > { %v1101_v56 = vmul.f32 %v1100_v55, %v1100_v55 }
 0x788   : > { %v1102_v57 = vsel %vm440_vm0, %v1101_v56, 0.0 }
 0x789   : > { %1103 = vadd.xlane.f32.xlu1 %v1102_v57 }
 0x7fc   : > { %v1104_v61 = vpop.xlane.xlu1 %1103 }
 0x7fd   : > { %v1105_v62 = vmul.f32 %v1104_v61, %v2120_v50 }
 0x7ff   : > { %v1106_v63 = vadd.f32 1e-05, %v1105_v62 }
 0x801   : > { %1601 = vrsqrt.f32 %v1106_v63  ;;  %vm1113_vm8 = vweird.f32 %v1106_v63 }
 0x807   : > { %v1602_v0 = vpop.eup %1601 }
 0x808   : > { %v1108_v1 = vmul.f32 %v1602_v0, %v1106_v63  ;;  %vm1114_vm7 = vweird.f32 %v1602_v0 }
 0x809   : > { %vm1115_vm9 = vmor %vm1113_vm8, %vm1114_vm7 }
 0x80a   : > { %v1109_v2 = vmul.f32 %v1602_v0, %v1108_v1 }
 0x80c   : > { %v1110_v3 = vmul.f32 0.5, %v1109_v2 }
 0x80e   : > { %v1111_v4 = vsub.f32 1.5, %v1110_v3 }
 0x810   : > { %v1112_v5 = vmul.f32 %v1602_v0, %v1111_v4 }
 0x812   : > { %v1116_v7 = vsel %vm1115_vm9, %v1602_v0, %v1112_v5 }
 0x813   : > { %v1117_v8 = vmul.f32 %v1116_v7, %v1100_v55 }
 0x815   : > { %v1119_v10 = vmul.f32 %v1568_v6, %v1117_v8 }
 0x817   : > { %v1121_v11 = vadd.f32 %v1569_v9, %v1119_v10 }
 0x819   : > { %1442 = vmatmul.msk.f32.vlgmr.msrb.gmra.mxu0 %vm440_vm0, %v1121_v11 }
 0x896   : > { %v1149_v19 = vpop.f32.mrf.mxu0 }
 0x897   : > { %v1150_v20 = vadd.f32 %v1570_v18, %v1149_v19 }
 0x899   : > { %v1153_v21 = vmin.f32 %v1150_v20, 0.0  ;;  %vm1152_vm10 = vcmp.gt.f32.partialorder %v1150_v20, 0.0 }
 0x89b   : > { %v1154_v23 = vmul.f32 1.442695, %v1153_v21 }
 0x89d   : > { %1603 = vpow2.f32 %v1154_v23 }
 0x8a3   : > { %v1604_v24 = vpop.eup %1603 }
 0x8a4   : > { %v1443_v25 = vadd.f32 -1.0, %v1604_v24 }
 0x8a6   : > { %v1157_v26 = vsel %vm1152_vm10, %v1150_v20, %v1443_v25 }
 0x8a7   : > { %1448 = vmatmul.msk.f32.vlgmr.msrb.gmra.mxu1 %vm440_vm0, %v1157_v26 }
 0x924   : > { %v1185_v30 = vpop.f32.mrf.mxu1 }
 0x925   : > { %v1186_v31 = vadd.f32 %v1571_v29, %v1185_v30 }
 0x927   : > { %1453 = vmatmul.msk.f32.vlgmr.msrb.gmra.mxu2 %vm440_vm0, %v1186_v31 }
 0x9aa   : > { %v1215_v33 = vpop.f32.mrf.mxu2 }
 0x9ab   : > { %v1216_v34 = vadd.f32 %v1572_v32, %v1215_v33 }
 0x9ad   : > { %1224 = vrot.lane.b32.xlu2 %v1216_v34, %s1848_s24  ;;  %v1218_v35 = vsub.f32 0.0, %v1216_v34  ;;  %s1455_s24 = sshll.u32 %s1926_s16, 3  ;;  %s1259_s16 = scalar_lea.sflag [#allocation4], %s2039_s6 }
 0x9ae   : > { %s1269_s20 = scalar_lea.hbm %s2331_s9, %s1455_s24 }
 0x9af   : > { %v1219_v36 = vmul.f32 1.442695, %v1218_v35  ;;  %s1273_s19 = sshll.u32 %s1269_s20, 4  ;;  %s1274_s19 = int_to_ptr.hbm [resolvable:$true] %s1273_s19 }
 0x9b0   : > { %s1775_s12 = sshra.s32 %s1274_s19, 4  ;;  %s1776_s12 = int_to_ptr.hbm [resolvable:$true] %s1775_s12 }
 0x9b1   : > { %1605 = vpow2.f32 %v1219_v36  ;;  %s1777_s17 = scalar_lea.hbm %s1776_s12, 8  ;;  %p1782_p7 = scmp.lt.s32.totalorder %s1776_s12, %s2331_s9 }
 0x9b2   : > { %p1778_p1 = scmp.ne.s32.totalorder %s1776_s12, %s1777_s17  ;;  %p1783_p9 = scmp.lt.s32.totalorder %s1781_s11, %s1777_s17 }
 0x9b4   : > { %p1779_p3 = pnand %p1778_p1, %p1982_p0  ;;  %p1784_p8 = por %p1783_p9, %p1782_p7 }
 0x9b6   : > { %p1780_p13 = pneg %p1779_p3 }
 0x9b7   : > { %v1606_v37 = vpop.eup %1605 }
 0x9b8   : > { %v1221_v38 = vadd.f32 1.0, %v1606_v37  ;;  %p1785_p10 = pnand %p1784_p8, %p1780_p13 }
 0x9ba   : > { %1607 = vrcp.f32 %v1221_v38 }
 0x9c0   : > { %v1608_v39 = vpop.eup %1607 }
 0xa07   : > { %v1225_v40 = vpop.permute.xlu2 %1224 }
 0xa08   : > { %v1227_v41 = vmul.f32 %v1608_v39, %v1225_v40 }
 0xa0a   : > { %v1228_v42 = vadd.f32 %v1227_v41, %v1121_v11 }
 0xa0c   : > { %v1231_v43 = vsel %vm440_vm0, %v1228_v42, 0.0 }
 0xa0d   : > { %1232 = vadd.xlane.f32.xlu1 %v1231_v43 }
 0xa80   : > { %v1233_v44 = vpop.xlane.xlu1 %1232 }
 0xa81   : > { %v1234_v45 = vmul.f32 %v1233_v44, %v2120_v50 }
 0xa83   : > { %v1235_v46 = vsub.f32 %v1228_v42, %v1234_v45 }
 0xa85   : > { %v1236_v47 = vmul.f32 %v1235_v46, %v1235_v46 }
 0xa87   : > { %v1237_v48 = vsel %vm440_vm0, %v1236_v47, 0.0 }
 0xa88   : > { %1238 = vadd.xlane.f32.xlu0 %v1237_v48 }
 0xafb   : > { %v1239_v49 = vpop.xlane.xlu0 %1238 }
 0xafc   : > { %v1240_v51 = vmul.f32 %v1239_v49, %v2120_v50 }
 0xafe   : > { %v1241_v52 = vadd.f32 1e-05, %v1240_v51 }
 0xb00   : > { %1609 = vrsqrt.f32 %v1241_v52  ;;  %vm1248_vm12 = vweird.f32 %v1241_v52 }
 0xb06   : > { %v1610_v53 = vpop.eup %1609 }
 0xb07   : > { %v1243_v54 = vmul.f32 %v1610_v53, %v1241_v52  ;;  %vm1249_vm11 = vweird.f32 %v1610_v53 }
 0xb08   : > { %vm1250_vm13 = vmor %vm1248_vm12, %vm1249_vm11 }
 0xb09   : > { %v1244_v55 = vmul.f32 %v1610_v53, %v1243_v54 }
 0xb0b   : > { %v1245_v56 = vmul.f32 0.5, %v1244_v55 }
 0xb0d   : > { %v1246_v57 = vsub.f32 1.5, %v1245_v56 }
 0xb0f   : > { %v1247_v58 = vmul.f32 %v1610_v53, %v1246_v57 }
 0xb11   : > { %v1251_v50 = vsel %vm1250_vm13, %v1610_v53, %v1247_v58 }
 0xb12   : > { %v1252_v59 = vmul.f32 %v1251_v50, %v1235_v46 }
 0xb14   : > { %v1254_v61 = vmul.f32 %v1573_v22, %v1252_v59 }
 0xb16   : > { %v1256_v62 = vadd.f32 %v1574_v60, %v1254_v61 }
 0xb18   : > { %1257 = vst.msk [vmem:[%s433_s21] sm:$0xff] %vm440_vm0, %v1256_v62 }
 0xb19   : > { %1788 = shalt.err (!%p1785_p10)
}
 0xb1a   : > { %1474 = dma.vmem_to_hbm [thread:$0]  (%p1982_p0), %s1272_s5, 128, %s1274_s19, %s1259_s16  }
 0xb1b PF: > { %s2356_s23 = sld [smem:[#allocation18_spill]]  ;;  %s1285_s28 = sand.u32 1, %s1827_s30  }
 0xb1c   : > { %s1286_s25 = scalar_lea.sflag [#allocation4], %s1285_s28 }
 0xb21   : > { %p2357_p11 = scmp.ge.s32.totalorder %s2356_s23, 2 }
 0xb23   : > { %p1494_p5 = pnand %p2357_p11, %p1990_p6 }
 0xb25   : > { %p1495_p12 = pneg %p1494_p5 }
 0xb27   : > { %1822 = dma.done.wait (%p1495_p12), %s1286_s25, 128  }
 0xb28   : > { %1824 = vsyncadd (%p1495_p12), %s1286_s25, 4294967168  ;;  %s2358_s12 = sld [smem:[#allocation19_spill]]  ;;  %s2361_s30 = smov %s1831_s10 }
 0xb29   : > { %s2359_s26 = sld [smem:[#allocation17_spill]] }
 0xb2a   : > { %s2360_s11 = sld [smem:[#allocation20_spill]] }
 0xb2e   : > { %p26_p2 = scmp.ge.s32.totalorder %s2358_s12, 4  }
 0xb2f   : > { %s2362_s10 = smov %s2359_s26 }
 0xb30   :  { %28 = sbr.rel (!%p26_p2) target bundleno = 12 (0xc), region = 131 }
 0xb35   :  { %1292 = vsyncpa [#allocation3], 1 }
 0xb36   :  { %1294 = vsyncpa [#allocation3 + $0x1], 1 }
 0xb37   :  { %1295 = vsyncpa [#allocation6], 1 }
 0xb38   :  { %1297 = vsyncpa [#allocation6 + $0x1], 1 }
 0xb39   :  { %1298 = vsyncpa [#allocation9], 1 }
 0xb3a   :  { %1299 = vsyncpa [#allocation4], 1 }
 0xb3b   :  { %1301 = vsyncpa [#allocation4 + $0x1], 1 }

</bundles_post_ra>
